<compile_context>
chip_gen: v5e
topology: v5e:2x2
jax: 0.10.0
libtpu: 0.0.40
codegen_flags: <defaults>
</compile_context>

<pallas_src>
import functools

import jax
import jax.numpy as jnp
from jax.experimental import pallas as pl
from jax.experimental.pallas import tpu as pltpu


# ----------------------------------- kernel -----------------------------------
def _softermax_kernel(x_ref, o_ref, *, subtract_max: bool):
    x = x_ref[...].astype(jnp.float32)                    # (rows_tile, D)
    if subtract_max:
        x = x - jnp.max(x, axis=-1, keepdims=True)        # XLU cross-lane max
    e = jnp.exp2(x)                                       # EUP, matches 2**x
    denom = jnp.sum(e, axis=-1, keepdims=True)            # XLU cross-lane sum
    # Exact reciprocal on the tiny (rows, 1) denominator: keeps every row sum
    # at ~1 (previous approx=True reciprocal caused a 3.5e-3 row-sum error).
    inv = jnp.float32(1.0) / denom
    o_ref[...] = (e * inv).astype(o_ref.dtype)


# ------------------------------- tile selection --------------------------------
_FALLBACK_PER_BUFFER_BYTES = 2 << 20  # 2 MiB if the chip query is unavailable


def _vmem_budget_per_buffer() -> int:
    """Generation-aware per-buffer byte budget.

    in + out are each double-buffered (~4 live buffers), so cap one buffer at
    ~vmem/16 (>=4x headroom for compiler scratch). 2-8 MiB in practice.
    """
    try:
        cap = int(pltpu.get_tpu_info().vmem_capacity_bytes)
    except Exception:
        return _FALLBACK_PER_BUFFER_BYTES
    return max(512 * 1024, min(8 << 20, cap // 16))


def _pick_block_rows(n_rows: int, d: int, dtype) -> int:
    itemsize = jnp.dtype(dtype).itemsize
    packing = max(1, 4 // max(1, itemsize))
    min_rows = 8 * packing                 # sublane multiple (8 f32 / 16 bf16 / 32 i8)
    row_bytes = max(1, d * itemsize)
    budget = _vmem_budget_per_buffer()
    block_rows = max(min_rows, budget // row_bytes)
    block_rows = max(min_rows, (block_rows // min_rows) * min_rows)
    if block_rows >= n_rows:
        return n_rows                      # single full-extent block (always legal)
    return block_rows


# --------------------------------- wrapper --------------------------------------
def softermax(x, dim: int = -1, subtract_max: bool = True):
    """Pallas TPU implementation of Softermax.forward (base-2 softmax)."""
    ndim = x.ndim
    dim = dim % ndim
    if dim != ndim - 1:
        # TODO(synk): a sublane-axis reduction kernel would avoid the two
        # full-array HBM transposes this moveaxis glue implies.
        y = softermax(jnp.moveaxis(x, dim, -1), -1, subtract_max)
        return jnp.moveaxis(y, -1, dim)

    orig_shape = x.shape
    d = int(orig_shape[-1])
    n_rows = 1
    for s in orig_shape[:-1]:
        n_rows *= int(s)
    x2 = x.reshape(n_rows, d)

    itemsize = jnp.dtype(x.dtype).itemsize
    block_rows = _pick_block_rows(n_rows, d, x.dtype)
    grid_r = pl.cdiv(n_rows, block_rows)   # ragged trailing block is fine: per-row reduction

    # Raise the scoped-VMEM limit only when the chosen tiles actually need it.
    block_bytes = block_rows * d * itemsize
    needed = int(4 * block_bytes * 1.5)    # in+out double-buffered, 1.5x headroom
    vmem_limit = needed if needed > (32 << 20) else None

    n_elems = n_rows * d
    cost = pl.CostEstimate(
        flops=4 * n_elems,                 # max-reduce, sub, sum-reduce, mul
        transcendentals=n_elems,           # exp2
        bytes_accessed=2 * n_elems * itemsize,
    )

    kernel = functools.partial(_softermax_kernel, subtract_max=subtract_max)
    out2 = pl.pallas_call(
        kernel,
        out_shape=jax.ShapeDtypeStruct((n_rows, d), x.dtype),
        grid=(grid_r,),
        in_specs=[pl.BlockSpec((block_rows, d), lambda i: (i, 0))],
        out_specs=pl.BlockSpec((block_rows, d), lambda i: (i, 0)),
        compiler_params=pltpu.CompilerParams(
            dimension_semantics=("parallel",),
            vmem_limit_bytes=vmem_limit,
        ),
        cost_estimate=cost,
    )(x2)
    return out2.reshape(orig_shape)


# ------------------------------ pure-JAX reference ----------------------------
def softermax_ref(x, dim=-1, subtract_max=True):
    x = x.astype(jnp.float32)
    if subtract_max:
        x = x - jnp.max(x, axis=dim, keepdims=True)
    e = jnp.exp2(x)
    return e / jnp.sum(e, axis=dim, keepdims=True)


# ----------------------------------- main --------------------------------------
if __name__ == "__main__":
    key = jax.random.PRNGKey(0)
    # Attention-score-like input (batch=2, heads=4, seq_q=16, seq_k=128):
    # last dim = 128 keeps every output store lane-dense (unmasked vst).
    x = 3.0 * jax.random.normal(key, (2, 4, 16, 128), jnp.float32)

    # default path: subtract_max=True, dim=-1
    y = jax.block_until_ready(softermax(x))
    assert y.shape == x.shape
    err = float(jnp.max(jnp.abs(y - softermax_ref(x))))
    assert err < 2e-3, f"max abs diff {err}"
    row_sum_err = float(jnp.max(jnp.abs(jnp.sum(y, -1) - 1.0)))
    assert row_sum_err < 2e-3, f"row-sum err {row_sum_err}"

    # other branch of the module: subtract_max=False
    y2 = jax.block_until_ready(softermax(x, subtract_max=False))
    err2 = float(jnp.max(jnp.abs(y2 - softermax_ref(x, subtract_max=False))))
    assert err2 < 2e-3, f"max abs diff (no max subtraction) {err2}"

    # non-default reduction axis (exercises the moveaxis glue path)
    y3 = jax.block_until_ready(softermax(x, dim=2))
    err3 = float(jnp.max(jnp.abs(y3 - softermax_ref(x, dim=2))))
    assert err3 < 2e-3, f"max abs diff (dim=2) {err3}"

    print("KERNEL_OK")
</pallas_src>

<mosaic_0001>
module attributes {stable_mosaic.version = 11 : i64} {
  func.func @_softermax_kernel(%arg0: i32, %arg1: memref<128x128xf32, #tpu.memory_space<vmem>>, %arg2: memref<128x128xf32, #tpu.memory_space<vmem>>) attributes {dimension_semantics = [#tpu.dimension_semantics<parallel>], iteration_bounds = array<i64: 1>, scalar_prefetch = 0 : i64, scratch_operands = 0 : i64, tpu.core_type = #tpu.core_type<tc>, window_params = [{transform_indices = @transform_0, window_bounds = array<i64: 128, 128>}, {transform_indices = @transform_1, window_bounds = array<i64: 128, 128>}]} {
    %c0 = arith.constant 0 : index
    %c0_0 = arith.constant 0 : index
    %0 = vector.load %arg1[%c0, %c0_0] : memref<128x128xf32, #tpu.memory_space<vmem>>, vector<128x128xf32>
    %cst = arith.constant dense<0xFF800000> : vector<128xf32>
    %1 = vector.multi_reduction <maximumf>, %0, %cst [1] : vector<128x128xf32> to vector<128xf32>
    %2 = vector.shape_cast %1 : vector<128xf32> to vector<128x1xf32>
    %3 = vector.broadcast %2 : vector<128x1xf32> to vector<128x128xf32>
    %4 = arith.subf %0, %3 : vector<128x128xf32>
    %5 = math.exp2 %4 : vector<128x128xf32>
    %cst_1 = arith.constant dense<0.000000e+00> : vector<128xf32>
    %6 = vector.multi_reduction <add>, %5, %cst_1 [1] : vector<128x128xf32> to vector<128xf32>
    %7 = vector.shape_cast %6 : vector<128xf32> to vector<128x1xf32>
    %cst_2 = arith.constant 1.000000e+00 : f32
    %8 = vector.broadcast %cst_2 : f32 to vector<128x1xf32>
    %9 = arith.divf %8, %7 : vector<128x1xf32>
    %10 = vector.broadcast %9 : vector<128x1xf32> to vector<128x128xf32>
    %11 = arith.mulf %5, %10 : vector<128x128xf32>
    %c0_3 = arith.constant 0 : index
    %c0_4 = arith.constant 0 : index
    %12 = vector.load %arg2[%c0_3, %c0_4] : memref<128x128xf32, #tpu.memory_space<vmem>>, vector<128x128xf32>
    tpu.vector_store %arg2[%c0_3, %c0_4], %11 {strides = array<i32>} : memref<128x128xf32, #tpu.memory_space<vmem>>, vector<128x128xf32>,
    return
  }
  func.func @transform_0(%arg0: i32) -> (i32, i32) {
    %c0_i32 = arith.constant 0 : i32
    %c0_i32_0 = arith.constant 0 : i32
    return %arg0, %c0_i32 : i32, i32
  }
  func.func @transform_1(%arg0: i32) -> (i32, i32) {
    %c0_i32 = arith.constant 0 : i32
    %c0_i32_0 = arith.constant 0 : i32
    return %arg0, %c0_i32 : i32, i32
  }
}

</mosaic_0001>

<bundles_post_ra>
// kernel: tpu_custom_call.1
= control target key start
LH: loop header
LB: loop body
LE: loop exit
PB: predicated region body
PF: predicated region fallthrough
CT: control target
= control target key end

     0   :  { %6 = vsyncpa [#allocation3], 0  ;;  %s835_s0 = inlined_call_operand.hbm [shape: f32[128,128], index: 0, kind: input, shape index: {}]   ;;  %s836_s1 = inlined_call_operand.hbm [shape: f32[128,128], index: 1, kind: output, shape index: {}]  }
   0x1   :  { %7 = vsyncpa [#allocation4], 0  ;;  %s12_s8 = sshll.u32 %s835_s0, 4  ;;  %s548_s9 = smov [#allocation2]   ;;  %s13_s8 = int_to_ptr.hbm [resolvable:$true] %s12_s8 }
   0x2   :  { %s14_s10 = sshll.u32 %s548_s9, 4  ;;  %s549_s11 = smov 128   ;;  %s15_s10 = int_to_ptr.vmem [resolvable:$true] %s14_s10 }
   0x3   :  { %s550_s12 = smov 8  }
   0x4   :  { %20 = dma.hbm_to_vmem [thread:$0]  %s13_s8, 2048, %s15_s10, [#allocation3], %s549_s11, %s549_s11, %s550_s12  }
   0x5   :  { %544 = dma.done.wait [#allocation3], 2048  }
   0x6   :  { %545 = vsyncadd [#allocation3], 4294965248  ;;  %v568_v0 = vld [vmem:[#allocation2 + $0x20] sm:$0xff]  ;;  %v27_v1 = vld [vmem:[#allocation2 + $0x10] sm:$0xff]  ;;  %s551_s0 = smov [#allocation5]   ;;  %s415_s16 = sshll.u32 %s836_s1, 4  ;;  %s416_s16 = int_to_ptr.hbm [resolvable:$true] %s415_s16 }
   0x7   :  { %v25_v2 = vld [vmem:[#allocation2] sm:$0xff]  ;;  %49 = vmax.xlane.f32.xlu2 %v568_v0  ;;  %45 = vmax.xlane.f32.xlu1 %v27_v1  ;;  %v30_v3 = vld [vmem:[#allocation2 + $0x28] sm:$0xff]  ;;  %v28_v4 = vld [vmem:[#allocation2 + $0x18] sm:$0xff]  ;;  %s413_s13 = sshll.u32 %s551_s0, 4  ;;  %s414_s13 = int_to_ptr.vmem [resolvable:$true] %s413_s13 }
   0x8   :  { %41 = vmax.xlane.f32.xlu0 %v25_v2  ;;  %v26_v5 = vld [vmem:[#allocation2 + $0x8] sm:$0xff]  ;;  %v33_v6 = vld [vmem:[#allocation2 + $0x40] sm:$0xff]  ;;  %v32_v7 = vld [vmem:[#allocation2 + $0x38] sm:$0xff] }
   0x9   :  { %v31_v8 = vld [vmem:[#allocation2 + $0x30] sm:$0xff]  ;;  %v36_v9 = vld [vmem:[#allocation2 + $0x58] sm:$0xff]  ;;  %v34_v11 = vld [vmem:[#allocation2 + $0x48] sm:$0xff] }
   0xa   :  { %v571_v10 = vld [vmem:[#allocation2 + $0x50] sm:$0xff]  ;;  %v576_v13 = vld [vmem:[#allocation2 + $0x68] sm:$0xff]  ;;  %v578_v14 = vld [vmem:[#allocation2 + $0x60] sm:$0xff] }
   0xb   :  { %v574_v12 = vld [vmem:[#allocation2 + $0x70] sm:$0xff]  ;;  %v583_v15 = vld [vmem:[#allocation2 + $0x78] sm:$0xff] }
   0xf   :  { %51 = vmax.xlane.f32.xlu2 %v30_v3  ;;  %47 = vmax.xlane.f32.xlu1 %v28_v4 }
  0x10   :  { %43 = vmax.xlane.f32.xlu0 %v26_v5 }
  0x17   :  { %57 = vmax.xlane.f32.xlu2 %v33_v6  ;;  %55 = vmax.xlane.f32.xlu1 %v32_v7 }
  0x18   :  { %53 = vmax.xlane.f32.xlu0 %v31_v8 }
  0x1f   :  { %63 = vmax.xlane.f32.xlu2 %v36_v9  ;;  %61 = vmax.xlane.f32.xlu1 %v571_v10 }
  0x20   :  { %59 = vmax.xlane.f32.xlu0 %v34_v11 }
  0x27   :  { %69 = vmax.xlane.f32.xlu2 %v574_v12  ;;  %67 = vmax.xlane.f32.xlu1 %v576_v13 }
  0x28   :  { %65 = vmax.xlane.f32.xlu0 %v578_v14 }
  0x30   :  { %71 = vmax.xlane.f32.xlu0 %v583_v15 }
  0x7a   :  { %v50_v16 = vpop.xlane.xlu2 %49  ;;  %v46_v17 = vpop.xlane.xlu1 %45 }
  0x7b   :  { %v75_v18 = vsub.f32 %v27_v1, %v46_v17  ;;  %v42_v19 = vpop.xlane.xlu0 %41  ;;  %v77_v32 = vsub.f32 %v568_v0, %v50_v16 }
  0x7c   :  { %v73_v20 = vsub.f32 %v25_v2, %v42_v19 }
  0x7d   :  { %432 = vpow2.f32 %v75_v18 }
  0x7e   :  { %434 = vpow2.f32 %v73_v20 }
  0x82   :  { %v52_v21 = vpop.xlane.xlu2 %51  ;;  %v48_v22 = vpop.xlane.xlu1 %47 }
  0x83   :  { %v78_v23 = vsub.f32 %v30_v3, %v52_v21  ;;  %v76_v24 = vsub.f32 %v28_v4, %v48_v22  ;;  %v44_v25 = vpop.xlane.xlu0 %43  ;;  %v586_v26 = vpop.eup %432 }
  0x84   :  { %v74_v27 = vsub.f32 %v26_v5, %v44_v25  ;;  %v588_v28 = vpop.eup %434  ;;  %109 = vadd.xlane.f32.xlu0 %v586_v26 }
  0x85   :  { %436 = vpow2.f32 %v78_v23  ;;  %105 = vadd.xlane.f32.xlu1 %v588_v28 }
  0x86   :  { %438 = vpow2.f32 %v76_v24 }
  0x87   :  { %440 = vpow2.f32 %v74_v27 }
  0x8a   :  { %v58_v29 = vpop.xlane.xlu2 %57  ;;  %v56_v30 = vpop.xlane.xlu1 %55 }
  0x8b   :  { %v592_v31 = vpop.eup %436  ;;  %v81_v33 = vsub.f32 %v33_v6, %v58_v29  ;;  %v54_v34 = vpop.xlane.xlu0 %53  ;;  %v80_v38 = vsub.f32 %v32_v7, %v56_v30 }
  0x8c   :  { %v595_v35 = vpop.eup %438  ;;  %v79_v36 = vsub.f32 %v31_v8, %v54_v34  ;;  %115 = vadd.xlane.f32.xlu0 %v592_v31 }
  0x8d   :  { %v597_v37 = vpop.eup %440  ;;  %442 = vpow2.f32 %v81_v33  ;;  %111 = vadd.xlane.f32.xlu1 %v595_v35 }
  0x8e   :  { %444 = vpow2.f32 %v79_v36  ;;  %107 = vadd.xlane.f32.xlu2 %v597_v37 }
  0x8f   :  { %446 = vpow2.f32 %v77_v32 }
  0x90   :  { %448 = vpow2.f32 %v80_v38 }
  0x92   :  { %v64_v39 = vpop.xlane.xlu2 %63  ;;  %v62_v45 = vpop.xlane.xlu1 %61 }
  0x93   :  { %v602_v40 = vpop.eup %442  ;;  %v84_v41 = vsub.f32 %v36_v9, %v64_v39  ;;  %v60_v42 = vpop.xlane.xlu0 %59  ;;  %v83_v47 = vsub.f32 %v571_v10, %v62_v45 }
  0x94   :  { %v604_v43 = vpop.eup %444  ;;  %v82_v44 = vsub.f32 %v34_v11, %v60_v42  ;;  %121 = vadd.xlane.f32.xlu0 %v602_v40 }
  0x95   :  { %v606_v46 = vpop.eup %446  ;;  %450 = vpow2.f32 %v84_v41  ;;  %117 = vadd.xlane.f32.xlu1 %v604_v43 }
  0x96   :  { %452 = vpow2.f32 %v82_v44  ;;  %113 = vadd.xlane.f32.xlu2 %v606_v46  ;;  %v612_v48 = vpop.eup %448 }
  0x97   :  { %454 = vpow2.f32 %v83_v47 }
  0x9a   :  { %v70_v49 = vpop.xlane.xlu2 %69  ;;  %v68_v55 = vpop.xlane.xlu1 %67 }
  0x9b   :  { %v614_v50 = vpop.eup %450  ;;  %v87_v51 = vsub.f32 %v574_v12, %v70_v49  ;;  %v66_v52 = vpop.xlane.xlu0 %65  ;;  %v86_v56 = vsub.f32 %v576_v13, %v68_v55 }
  0x9c   :  { %v617_v53 = vpop.eup %452  ;;  %v85_v54 = vsub.f32 %v578_v14, %v66_v52  ;;  %127 = vadd.xlane.f32.xlu0 %v614_v50 }
  0x9d   :  { %456 = vpow2.f32 %v87_v51  ;;  %123 = vadd.xlane.f32.xlu1 %v617_v53  ;;  %v624_v57 = vpop.eup %454 }
  0x9e   :  { %458 = vpow2.f32 %v85_v54  ;;  %119 = vadd.xlane.f32.xlu2 %v612_v48 }
  0x9f   :  { %460 = vpow2.f32 %v86_v56 }
  0xa3   :  { %v626_v58 = vpop.eup %456  ;;  %v72_v59 = vpop.xlane.xlu0 %71 }
  0xa4   :  { %v628_v60 = vpop.eup %458  ;;  %v88_v61 = vsub.f32 %v583_v15, %v72_v59  ;;  %133 = vadd.xlane.f32.xlu0 %v626_v58 }
  0xa5   :  { %129 = vadd.xlane.f32.xlu1 %v628_v60  ;;  %v634_v62 = vpop.eup %460 }
  0xa6   :  { %462 = vpow2.f32 %v88_v61  ;;  %125 = vadd.xlane.f32.xlu2 %v624_v57 }
  0xac   :  { %v636_v63 = vpop.eup %462 }
  0xad   :  { %135 = vadd.xlane.f32.xlu1 %v636_v63 }
  0xae   :  { %131 = vadd.xlane.f32.xlu2 %v634_v62 }
  0xf7   :  { %v110_v0 = vpop.xlane.xlu0 %109 }
  0xf8   :  { %v106_v1 = vpop.xlane.xlu1 %105  ;;  %464 = vrcp.f32 %v110_v0  ;;  %v176_v7 = vand.u32 2147483647, %v110_v0  ;;  %v178_v12 = vand.u32 2147483648, %v110_v0  ;;  %vm172_vm3 = vweird.f32 %v110_v0 }
  0xf9   :  { %466 = vrcp.f32 %v106_v1  ;;  %v146_v10 = vand.u32 2147483647, %v106_v1  ;;  %v148_v14 = vand.u32 2147483648, %v106_v1  ;;  %vm142_vm1 = vweird.f32 %v106_v1 }
  0xfa   :  { %vm653_vm5 = vcmp.eq.f32.partialorder %v176_v7, 8.507059e+37  ;;  %v179_v20 = vor.u32 1.1754944e-38, %v178_v12 }
  0xfb   :  { %vm649_vm4 = vcmp.eq.f32.partialorder %v146_v10, 8.507059e+37  ;;  %v149_v23 = vor.u32 1.1754944e-38, %v148_v14 }
  0xfe   :  { %v465_v2 = vpop.eup %464 }
  0xff   :  { %v467_v3 = vpop.eup %466  ;;  %v168_v4 = vmul.f32 %v465_v2, %v110_v0  ;;  %v640_v5 = vpop.xlane.xlu0 %115  ;;  %vm173_vm0 = vweird.f32 %v465_v2 }
 0x100   :  { %v138_v6 = vmul.f32 %v467_v3, %v106_v1  ;;  %v642_v8 = vpop.xlane.xlu1 %111  ;;  %468 = vrcp.f32 %v640_v5  ;;  %vm143_vm2 = vweird.f32 %v467_v3  ;;  %vm174_vm6 = vmor %vm172_vm3, %vm173_vm0  ;;  %vm217_vm8 = vweird.f32 %v640_v5 }
 0x101   :  { %v644_v9 = vpop.xlane.xlu2 %107  ;;  %v169_v11 = vsub.f32 1.0, %v168_v4  ;;  %470 = vrcp.f32 %v642_v8  ;;  %vm187_vm7 = vweird.f32 %v642_v8  ;;  %vm144_vm9 = vmor %vm142_vm1, %vm143_vm2  ;;  %v191_v27 = vand.u32 2147483647, %v642_v8 }
 0x102   :  { %v139_v13 = vsub.f32 1.0, %v138_v6  ;;  %472 = vrcp.f32 %v644_v9  ;;  %v193_v29 = vand.u32 2147483648, %v642_v8  ;;  %v161_v38 = vand.u32 2147483647, %v644_v9 }
 0x103   :  { %v170_v15 = vmul.f32 %v465_v2, %v169_v11  ;;  %v163_v45 = vand.u32 2147483648, %v644_v9  ;;  %v221_v55 = vand.u32 2147483647, %v640_v5  ;;  %v223_v56 = vand.u32 2147483648, %v640_v5 }
 0x104   :  { %v140_v16 = vmul.f32 %v467_v3, %v139_v13  ;;  %vm682_vm12 = vcmp.eq.f32.partialorder %v191_v27, 8.507059e+37  ;;  %vm157_vm13 = vweird.f32 %v644_v9  ;;  %vm697_vm1 = vcmp.eq.f32.partialorder %v161_v38, 8.507059e+37 }
 0x105   :  { %v171_v18 = vadd.f32 %v465_v2, %v170_v15  ;;  %v224_v10 = vor.u32 1.1754944e-38, %v223_v56  ;;  %vm222_vm3 = vcmp.eq.f32.partialorder %v221_v55, 8.507059e+37 }
 0x106   :  { %v469_v21 = vpop.eup %468  ;;  %v141_v22 = vadd.f32 %v467_v3, %v140_v16 }
 0x107   :  { %v471_v24 = vpop.eup %470  ;;  %v175_v25 = vsel %vm174_vm6, %v465_v2, %v171_v18  ;;  %v213_v30 = vmul.f32 %v469_v21, %v640_v5  ;;  %vm218_vm10 = vweird.f32 %v469_v21  ;;  %v194_v2 = vor.u32 1.1754944e-38, %v193_v29 }
 0x108   :  { %v473_v32 = vpop.eup %472  ;;  %v145_v33 = vsel %vm144_vm9, %v467_v3, %v141_v22  ;;  %v180_v34 = vsel %vm653_vm5, %v179_v20, %v175_v25  ;;  %v183_v36 = vmul.f32 %v471_v24, %v642_v8  ;;  %v673_v47 = vpop.xlane.xlu1 %117  ;;  %vm188_vm11 = vweird.f32 %v471_v24  ;;  %vm690_vm15 = vmor %vm217_vm8, %vm218_vm10 }
 0x109   :  { %v666_v39 = vpop.xlane.xlu2 %113  ;;  %v150_v41 = vsel %vm649_vm4, %v149_v23, %v145_v33  ;;  %v379_v42 = vmul.f32 %v586_v26, %v180_v34  ;;  %v153_v44 = vmul.f32 %v473_v32, %v644_v9  ;;  %v214_v52 = vsub.f32 1.0, %v213_v30  ;;  %v679_v26 = vpop.xlane.xlu0 %121  ;;  %vm189_vm0 = vmor %vm187_vm7, %vm188_vm11 }
 0x10a   :  { %v377_v49 = vmul.f32 %v588_v28, %v150_v41  ;;  %v184_v51 = vsub.f32 1.0, %v183_v36  ;;  %474 = vrcp.f32 %v666_v39  ;;  %vm158_vm14 = vweird.f32 %v473_v32 }
 0x10b   :  { %395 = vst [vmem:[#allocation5 + $0x10] sm:$0xff] %v379_v42  ;;  %v154_v54 = vsub.f32 1.0, %v153_v44  ;;  %v215_v61 = vmul.f32 %v469_v21, %v214_v52  ;;  %476 = vrcp.f32 %v673_v47  ;;  %v164_v9 = vor.u32 1.1754944e-38, %v163_v45  ;;  %vm159_vm2 = vmor %vm157_vm13, %vm158_vm14 }
 0x10c   :  { %393 = vst [vmem:[#allocation5] sm:$0xff] %v377_v49  ;;  %v185_v59 = vmul.f32 %v471_v24, %v184_v51  ;;  %478 = vrcp.f32 %v679_v26  ;;  %v206_v13 = vand.u32 2147483647, %v666_v39  ;;  %vm202_vm4 = vweird.f32 %v666_v39 }
 0x10d   :  { %v155_v0 = vmul.f32 %v473_v32, %v154_v54  ;;  %v216_v3 = vadd.f32 %v469_v21, %v215_v61  ;;  %vm232_vm6 = vweird.f32 %v673_v47  ;;  %v238_v34 = vand.u32 2147483648, %v673_v47 }
 0x10e   :  { %v186_v1 = vadd.f32 %v471_v24, %v185_v59  ;;  %vm719_vm5 = vcmp.eq.f32.partialorder %v206_v13, 8.507059e+37  ;;  %v266_v36 = vand.u32 2147483647, %v679_v26  ;;  %v268_v38 = vand.u32 2147483648, %v679_v26 }
 0x10f   :  { %v156_v6 = vadd.f32 %v473_v32, %v155_v0  ;;  %v220_v5 = vsel %vm690_vm15, %v469_v21, %v216_v3  ;;  %vm262_vm11 = vweird.f32 %v679_v26 }
 0x110   :  { %v475_v11 = vpop.eup %474  ;;  %v190_v12 = vsel %vm189_vm0, %v471_v24, %v186_v1  ;;  %v225_v15 = vsel %vm222_vm3, %v224_v10, %v220_v5  ;;  %v208_v24 = vand.u32 2147483648, %v666_v39  ;;  %v717_v27 = vpop.xlane.xlu1 %123  ;;  %vm745_vm14 = vcmp.eq.f32.partialorder %v266_v36, 8.507059e+37 }
 0x111   :  { %v195_v8 = vsel %vm682_vm12, %v194_v2, %v190_v12  ;;  %v160_v14 = vsel %vm159_vm2, %v473_v32, %v156_v6  ;;  %v198_v16 = vmul.f32 %v475_v11, %v666_v39  ;;  %v707_v17 = vpop.xlane.xlu2 %119  ;;  %v477_v18 = vpop.eup %476  ;;  %v382_v21 = vmul.f32 %v592_v31, %v225_v15 }
 0x112   :  { %v380_v19 = vmul.f32 %v595_v35, %v195_v8  ;;  %v165_v20 = vsel %vm697_vm1, %v164_v9, %v160_v14  ;;  %v228_v25 = vmul.f32 %v477_v18, %v673_v47  ;;  %v479_v29 = vpop.eup %478  ;;  %v236_v31 = vand.u32 2147483647, %v673_v47  ;;  %v727_v33 = vpop.xlane.xlu0 %127 }
 0x113   :  { %v378_v22 = vmul.f32 %v597_v37, %v165_v20  ;;  %v199_v23 = vsub.f32 1.0, %v198_v16  ;;  %480 = vrcp.f32 %v707_v17  ;;  %vm203_vm7 = vweird.f32 %v475_v11  ;;  %398 = vst [vmem:[#allocation5 + $0x28] sm:$0xff] %v382_v21 }
 0x114   :  { %396 = vst [vmem:[#allocation5 + $0x18] sm:$0xff] %v380_v19  ;;  %v229_v30 = vsub.f32 1.0, %v228_v25  ;;  %v258_v32 = vmul.f32 %v479_v29, %v679_v26  ;;  %482 = vrcp.f32 %v717_v27  ;;  %vm233_vm8 = vweird.f32 %v477_v18  ;;  %vm204_vm9 = vmor %vm202_vm4, %vm203_vm7 }
 0x115   :  { %394 = vst [vmem:[#allocation5 + $0x8] sm:$0xff] %v378_v22  ;;  %v200_v37 = vmul.f32 %v475_v11, %v199_v23  ;;  %v209_v45 = vor.u32 1.1754944e-38, %v208_v24  ;;  %vm735_vm10 = vcmp.eq.f32.partialorder %v236_v31, 8.507059e+37  ;;  %484 = vrcp.f32 %v727_v33  ;;  %vm234_vm13 = vmor %vm232_vm6, %vm233_vm8 }
 0x116   :  { %v230_v42 = vmul.f32 %v477_v18, %v229_v30  ;;  %v259_v44 = vsub.f32 1.0, %v258_v32  ;;  %vm263_vm12 = vweird.f32 %v479_v29  ;;  %v239_v39 = vor.u32 1.1754944e-38, %v238_v34 }
 0x117   :  { %v201_v41 = vadd.f32 %v475_v11, %v200_v37  ;;  %v269_v61 = vor.u32 1.1754944e-38, %v268_v38  ;;  %vm264_vm15 = vmor %vm262_vm11, %vm263_vm12  ;;  %vm247_vm0 = vweird.f32 %v707_v17  ;;  %v251_v47 = vand.u32 2147483647, %v707_v17 }
 0x118   :  { %v231_v52 = vadd.f32 %v477_v18, %v230_v42  ;;  %v260_v54 = vmul.f32 %v479_v29, %v259_v44  ;;  %v253_v7 = vand.u32 2147483648, %v707_v17  ;;  %vm277_vm2 = vweird.f32 %v717_v27  ;;  %v766_v26 = vpop.xlane.xlu1 %129 }
 0x119   :  { %v205_v51 = vsel %vm204_vm9, %v475_v11, %v201_v41  ;;  %v481_v55 = vpop.eup %480  ;;  %v751_v3 = vpop.xlane.xlu2 %125  ;;  %vm770_vm3 = vcmp.eq.f32.partialorder %v251_v47, 8.507059e+37  ;;  %v281_v16 = vand.u32 2147483647, %v717_v27  ;;  %vm307_vm6 = vweird.f32 %v727_v33 }
 0x11a   :  { %v210_v56 = vsel %vm719_vm5, %v209_v45, %v205_v51  ;;  %v235_v0 = vsel %vm234_vm13, %v477_v18, %v231_v52  ;;  %v261_v1 = vadd.f32 %v479_v29, %v260_v54  ;;  %v243_v2 = vmul.f32 %v481_v55, %v707_v17  ;;  %v483_v4 = vpop.eup %482 }
 0x11b   :  { %v381_v28 = vmul.f32 %v606_v46, %v210_v56  ;;  %v240_v6 = vsel %vm735_vm10, %v239_v39, %v235_v0  ;;  %v273_v11 = vmul.f32 %v483_v4, %v717_v27  ;;  %v485_v12 = vpop.eup %484  ;;  %vm248_vm1 = vweird.f32 %v481_v55 }
 0x11c   :  { %v383_v46 = vmul.f32 %v604_v43, %v240_v6  ;;  %v265_v9 = vsel %vm264_vm15, %v479_v29, %v261_v1  ;;  %v244_v10 = vsub.f32 1.0, %v243_v2  ;;  %486 = vrcp.f32 %v751_v3  ;;  %vm249_vm5 = vmor %vm247_vm0, %vm248_vm1 }
 0x11d   :  { %397 = vst [vmem:[#allocation5 + $0x20] sm:$0xff] %v381_v28  ;;  %v270_v5 = vsel %vm745_vm14, %v269_v61, %v265_v9  ;;  %v274_v43 = vsub.f32 1.0, %v273_v11  ;;  %v303_v14 = vmul.f32 %v485_v12, %v727_v33  ;;  %vm278_vm4 = vweird.f32 %v483_v4 }
 0x11e   :  { %399 = vst [vmem:[#allocation5 + $0x30] sm:$0xff] %v383_v46  ;;  %v385_v13 = vmul.f32 %v602_v40, %v270_v5  ;;  %v245_v8 = vmul.f32 %v481_v55, %v244_v10  ;;  %v283_v18 = vand.u32 2147483648, %v717_v27  ;;  %488 = vrcp.f32 %v766_v26  ;;  %v777_v40 = vpop.xlane.xlu0 %133  ;;  %vm279_vm8 = vmor %vm277_vm2, %vm278_vm4 }
 0x11f   :  { %v275_v20 = vmul.f32 %v483_v4, %v274_v43  ;;  %v304_v21 = vsub.f32 1.0, %v303_v14  ;;  %v254_v22 = vor.u32 1.1754944e-38, %v253_v7  ;;  %v311_v23 = vand.u32 2147483647, %v727_v33 }
 0x120   :  { %401 = vst [vmem:[#allocation5 + $0x40] sm:$0xff] %v385_v13  ;;  %v246_v19 = vadd.f32 %v481_v55, %v245_v8  ;;  %v313_v24 = vand.u32 2147483648, %v727_v33  ;;  %vm308_vm7 = vweird.f32 %v485_v12  ;;  %vm282_vm9 = vcmp.eq.f32.partialorder %v281_v16, 8.507059e+37 }
 0x121   :  { %v276_v29 = vadd.f32 %v483_v4, %v275_v20  ;;  %v305_v35 = vmul.f32 %v485_v12, %v304_v21  ;;  %v284_v17 = vor.u32 1.1754944e-38, %v283_v18  ;;  %490 = vrcp.f32 %v777_v40  ;;  %vm309_vm10 = vmor %vm307_vm6, %vm308_vm7  ;;  %v795_v42 = vpop.xlane.xlu2 %131 }
 0x122   :  { %v250_v25 = vsel %vm249_vm5, %v481_v55, %v246_v19  ;;  %v487_v31 = vpop.eup %486  ;;  %vm312_vm11 = vcmp.eq.f32.partialorder %v311_v23, 8.507059e+37  ;;  %v314_v41 = vor.u32 1.1754944e-38, %v313_v24  ;;  %v298_v52 = vand.u32 2147483648, %v751_v3  ;;  %v801_v55 = vpop.xlane.xlu1 %135 }
 0x123   :  { %v255_v37 = vsel %vm770_vm3, %v254_v22, %v250_v25  ;;  %v280_v32 = vsel %vm279_vm8, %v483_v4, %v276_v29  ;;  %v306_v34 = vadd.f32 %v485_v12, %v305_v35  ;;  %v288_v36 = vmul.f32 %v487_v31, %v751_v3 }
 0x124   :  { %v384_v30 = vmul.f32 %v612_v48, %v255_v37  ;;  %v285_v38 = vsel %vm282_vm9, %v284_v17, %v280_v32  ;;  %v489_v27 = vpop.eup %488  ;;  %v296_v48 = vand.u32 2147483647, %v751_v3  ;;  %vm293_vm12 = vweird.f32 %v487_v31 }
 0x125   :  { %v386_v44 = vmul.f32 %v617_v53, %v285_v38  ;;  %v310_v45 = vsel %vm309_vm10, %v485_v12, %v306_v34  ;;  %v289_v49 = vsub.f32 1.0, %v288_v36  ;;  %v318_v54 = vmul.f32 %v489_v27, %v766_v26 }
 0x126   :  { %400 = vst [vmem:[#allocation5 + $0x38] sm:$0xff] %v384_v30  ;;  %v315_v51 = vsel %vm312_vm11, %v314_v41, %v310_v45  ;;  %492 = vrcp.f32 %v795_v42  ;;  %vm292_vm13 = vweird.f32 %v751_v3  ;;  %v328_v59 = vand.u32 2147483648, %v766_v26 }
 0x127   :  { %402 = vst [vmem:[#allocation5 + $0x48] sm:$0xff] %v386_v44  ;;  %v388_v33 = vmul.f32 %v614_v50, %v315_v51  ;;  %v290_v56 = vmul.f32 %v487_v31, %v289_v49  ;;  %v491_v39 = vpop.eup %490  ;;  %v319_v53 = vsub.f32 1.0, %v318_v54  ;;  %vm297_vm14 = vcmp.eq.f32.partialorder %v296_v48, 8.507059e+37  ;;  %vm294_vm15 = vmor %vm292_vm13, %vm293_vm12 }
 0x128   :  { %v348_v28 = vmul.f32 %v491_v39, %v777_v40  ;;  %494 = vrcp.f32 %v801_v55  ;;  %v299_v0 = vor.u32 1.1754944e-38, %v298_v52  ;;  %vm323_vm0 = vweird.f32 %v489_v27 }
 0x129   :  { %404 = vst [vmem:[#allocation5 + $0x58] sm:$0xff] %v388_v33  ;;  %v291_v61 = vadd.f32 %v487_v31, %v290_v56  ;;  %v320_v50 = vmul.f32 %v489_v27, %v319_v53  ;;  %v326_v1 = vand.u32 2147483647, %v766_v26  ;;  %vm322_vm1 = vweird.f32 %v766_v26 }
 0x12a   :  { %v349_v3 = vsub.f32 1.0, %v348_v28  ;;  %vm352_vm2 = vweird.f32 %v777_v40  ;;  %v329_v47 = vor.u32 1.1754944e-38, %v328_v59  ;;  %v358_v7 = vand.u32 2147483648, %v777_v40  ;;  %vm324_vm3 = vmor %vm322_vm1, %vm323_vm0 }
 0x12b   :  { %v295_v2 = vsel %vm294_vm15, %v487_v31, %v291_v61  ;;  %v321_v6 = vadd.f32 %v489_v27, %v320_v50  ;;  %vm353_vm4 = vweird.f32 %v491_v39  ;;  %v356_v11 = vand.u32 2147483647, %v777_v40 }
 0x12c   :  { %v300_v4 = vsel %vm297_vm14, %v299_v0, %v295_v2  ;;  %v493_v46 = vpop.eup %492  ;;  %v350_v10 = vmul.f32 %v491_v39, %v349_v3  ;;  %vm327_vm5 = vcmp.eq.f32.partialorder %v326_v1, 8.507059e+37  ;;  %vm354_vm6 = vmor %vm352_vm2, %vm353_vm4  ;;  %v359_v14 = vor.u32 1.1754944e-38, %v358_v7 }
 0x12d   :  { %v387_v9 = vmul.f32 %v624_v57, %v300_v4  ;;  %v325_v12 = vsel %vm324_vm3, %v489_v27, %v321_v6  ;;  %v333_v5 = vmul.f32 %v493_v46, %v795_v42  ;;  %vm357_vm7 = vcmp.eq.f32.partialorder %v356_v11, 8.507059e+37 }
 0x12e   :  { %v495_v26 = vpop.eup %494  ;;  %v330_v13 = vsel %vm327_vm5, %v329_v47, %v325_v12  ;;  %v351_v8 = vadd.f32 %v491_v39, %v350_v10  ;;  %v341_v18 = vand.u32 2147483647, %v795_v42  ;;  %v343_v19 = vand.u32 2147483648, %v795_v42 }
 0x12f   :  { %403 = vst [vmem:[#allocation5 + $0x50] sm:$0xff] %v387_v9  ;;  %v389_v43 = vmul.f32 %v628_v60, %v330_v13  ;;  %v334_v57 = vsub.f32 1.0, %v333_v5  ;;  %v363_v15 = vmul.f32 %v495_v26, %v801_v55  ;;  %vm338_vm8 = vweird.f32 %v493_v46 }
 0x130   :  { %v355_v16 = vsel %vm354_vm6, %v491_v39, %v351_v8  ;;  %vm337_vm9 = vweird.f32 %v795_v42  ;;  %v373_v40 = vand.u32 2147483648, %v801_v55  ;;  %vm368_vm10 = vweird.f32 %v495_v26 }
 0x131   :  { %405 = vst [vmem:[#allocation5 + $0x60] sm:$0xff] %v389_v43  ;;  %v360_v20 = vsel %vm357_vm7, %v359_v14, %v355_v16  ;;  %v335_v21 = vmul.f32 %v493_v46, %v334_v57  ;;  %v364_v22 = vsub.f32 1.0, %v363_v15  ;;  %v371_v25 = vand.u32 2147483647, %v801_v55  ;;  %vm339_vm11 = vmor %vm337_vm9, %vm338_vm8 }
 0x132   :  { %v391_v60 = vmul.f32 %v626_v58, %v360_v20  ;;  %v344_v29 = vor.u32 1.1754944e-38, %v343_v19  ;;  %vm342_vm12 = vcmp.eq.f32.partialorder %v341_v18, 8.507059e+37  ;;  %vm367_vm13 = vweird.f32 %v801_v55 }
 0x133   :  { %v336_v23 = vadd.f32 %v493_v46, %v335_v21  ;;  %v365_v24 = vmul.f32 %v495_v26, %v364_v22  ;;  %vm369_vm14 = vmor %vm367_vm13, %vm368_vm10  ;;  %v374_v58 = vor.u32 1.1754944e-38, %v373_v40  ;;  %vm372_vm15 = vcmp.eq.f32.partialorder %v371_v25, 8.507059e+37 }
 0x134   :  { %407 = vst [vmem:[#allocation5 + $0x70] sm:$0xff] %v391_v60 }
 0x135   :  { %v340_v35 = vsel %vm339_vm11, %v493_v46, %v336_v23  ;;  %v366_v31 = vadd.f32 %v495_v26, %v365_v24 }
 0x136   :  { %v345_v37 = vsel %vm342_vm12, %v344_v29, %v340_v35 }
 0x137   :  { %v390_v17 = vmul.f32 %v634_v62, %v345_v37  ;;  %v370_v30 = vsel %vm369_vm14, %v495_v26, %v366_v31 }
 0x138   :  { %v375_v32 = vsel %vm372_vm15, %v374_v58, %v370_v30 }
 0x139   :  { %406 = vst [vmem:[#allocation5 + $0x68] sm:$0xff] %v390_v17  ;;  %v392_v34 = vmul.f32 %v636_v63, %v375_v32 }
 0x13b   :  { %408 = vst [vmem:[#allocation5 + $0x78] sm:$0xff] %v392_v34 }
 0x13c   :  { %421 = dma.vmem_to_hbm [thread:$0]  %s414_s13, 2048, %s416_s16, [#allocation4], %s549_s11, %s549_s11, %s550_s12  }
 0x13d   :  { %546 = dma.done.wait [#allocation4], 2048  }
 0x13e   :  { %547 = vsyncadd [#allocation4], 4294965248 }
 0x13f   :  { %426 = vsyncpa [#allocation3], 1 }
 0x140   :  { %427 = vsyncpa [#allocation4], 1 }

</bundles_post_ra>
